<compile_context>
chip_gen: v7x
topology: tpu7x:2x2x1
jax: 0.10.0
libtpu: 0.0.40
codegen_flags: <defaults>
</compile_context>

<pallas_src>
import jax
import jax.numpy as jnp
from jax.experimental import pallas as pl
from jax.experimental.pallas import tpu as pltpu


def _round_up(x, m):
    return ((x + m - 1) // m) * m


# ----------------------------------------------------------------------------
# Pallas kernel: out(Cout_pad, M) = relu(W(Cout_pad, K_pad) @ P(K_pad, M) + b)
# ----------------------------------------------------------------------------
def _matmul_bias_relu_kernel(w_ref, p_ref, b_ref, o_ref):
    acc = jnp.dot(w_ref[...], p_ref[...], preferred_element_type=jnp.float32)
    o_ref[...] = jnp.maximum(acc + b_ref[...], 0.0).astype(o_ref.dtype)


def _matmul_bias_relu_t(w_mat, patches, b_mat, *, tile_m=1024):
    """w_mat: (Cout_pad, K_pad) bf16, patches: (K_pad, M) bf16,
    b_mat: (Cout_pad, 1) f32  ->  (Cout_pad, M) f32."""
    Cout_pad, K_pad = w_mat.shape
    K_pad2, M = patches.shape
    assert K_pad == K_pad2

    if M <= tile_m or M % tile_m != 0:
        # Small problem (the toy shapes here): single invocation, all operands
        # VMEM-resident, no grid -> no per-step pipeline cost, no double buffers.
        return pl.pallas_call(
            _matmul_bias_relu_kernel,
            out_shape=jax.ShapeDtypeStruct((Cout_pad, M), jnp.float32),
            in_specs=[
                pl.BlockSpec(memory_space=pltpu.MemorySpace.VMEM),
                pl.BlockSpec(memory_space=pltpu.MemorySpace.VMEM),
                pl.BlockSpec(memory_space=pltpu.MemorySpace.VMEM),
            ],
            out_specs=pl.BlockSpec(memory_space=pltpu.MemorySpace.VMEM),
        )(w_mat, patches, b_mat)

    # Large-M path (real VGN sizes / large batch): tile the lane-dense M axis
    # and shard it across TensorCores; weights/bias are replicated per step.
    grid = (M // tile_m,)
    return pl.pallas_call(
        _matmul_bias_relu_kernel,
        out_shape=jax.ShapeDtypeStruct((Cout_pad, M), jnp.float32),
        grid=grid,
        in_specs=[
            pl.BlockSpec((Cout_pad, K_pad), lambda i: (0, 0)),
            pl.BlockSpec((K_pad, tile_m), lambda i: (0, i)),
            pl.BlockSpec((Cout_pad, 1), lambda i: (0, 0)),
        ],
        out_specs=pl.BlockSpec((Cout_pad, tile_m), lambda i: (0, i)),
        compiler_params=pltpu.CompilerParams(
            dimension_semantics=("parallel",)),
    )(w_mat, patches, b_mat)


# ----------------------------------------------------------------------------
# One conv layer on a channel-major activation (C, N, D, H, W)
# ----------------------------------------------------------------------------
def _conv3d_stride2_relu_cm(x_cm, weight, bias, k):
    """x_cm:   (Cin, N, D, H, W)      f32 (channel-major activation)
    weight: (Cout, Cin, k, k, k)   f32 (PyTorch OIDHW layout)
    bias:   (Cout,)                f32
    returns (Cout, N, Do, Ho, Wo)  f32 (channel-major)."""
    Cin, N, D, H, W = x_cm.shape
    Cout = weight.shape[0]
    stride = 2
    pad = k // 2
    Do = (D + 2 * pad - k) // stride + 1
    Ho = (H + 2 * pad - k) // stride + 1
    Wo = (W + 2 * pad - k) // stride + 1

    xp = jnp.pad(x_cm, ((0, 0), (0, 0), (pad, pad), (pad, pad), (pad, pad)))

    # im2col directly in (K, M) layout: rows ordered (ci, kd, kh, kw) to match
    # weight.reshape(Cout, Cin*k^3); columns ordered (n, do, ho, wo).  No big
    # minor-dim transposes (the stack lands data in the right order already).
    cols = []
    for kd in range(k):
        for kh in range(k):
            for kw in range(k):
                cols.append(
                    xp[:, :,
                       kd:kd + stride * Do:stride,
                       kh:kh + stride * Ho:stride,
                       kw:kw + stride * Wo:stride])
    K = Cin * k ** 3
    M = N * Do * Ho * Wo
    patches = jnp.stack(cols, axis=1).reshape(K, M)

    # Align to MXU-friendly sizes with zero padding (results unchanged).
    K_pad = _round_up(K, 128)
    Cout_pad = _round_up(Cout, 8)

    patches = jnp.pad(patches, ((0, K_pad - K), (0, 0))).astype(jnp.bfloat16)
    w_mat = jnp.pad(weight.reshape(Cout, K),
                    ((0, Cout_pad - Cout), (0, K_pad - K))).astype(jnp.bfloat16)
    b_mat = jnp.pad(bias.reshape(Cout, 1),
                    ((0, Cout_pad - Cout), (0, 0))).astype(jnp.float32)

    out = _matmul_bias_relu_t(w_mat, patches, b_mat)      # (Cout_pad, M) f32
    return out[:Cout].reshape(Cout, N, Do, Ho, Wo)


# ----------------------------------------------------------------------------
# Encoder
# ----------------------------------------------------------------------------
def init_encoder_params(key, in_channels, filters, kernels):
    params = []
    c_in = in_channels
    for c_out, k in zip(filters, kernels):
        key, kw_, kb_ = jax.random.split(key, 3)
        fan_in = c_in * k * k * k
        scale = 1.0 / jnp.sqrt(jnp.float32(fan_in))
        w = jax.random.uniform(kw_, (c_out, c_in, k, k, k),
                               jnp.float32, -scale, scale)
        b = jax.random.uniform(kb_, (c_out,), jnp.float32, -scale, scale)
        params.append((w, b, k))
        c_in = c_out
    return params


def encoder_forward(params, x):
    """x: (N, Cin, D, H, W) NCDHW (PyTorch layout) -> (N, Cout, Do, Ho, Wo)."""
    x_cm = jnp.transpose(x, (1, 0, 2, 3, 4))   # channel-major between layers
    for (w, b, k) in params:
        x_cm = _conv3d_stride2_relu_cm(x_cm, w, b, k)
    return jnp.transpose(x_cm, (1, 0, 2, 3, 4))


# Pure-JAX reference (lax conv) mirroring the kernel's bf16-operand /
# f32-accumulate numerics, used only for the correctness check.
def _encoder_reference(params, x):
    for (w, b, k) in params:
        pad = k // 2
        xb = x.astype(jnp.bfloat16).astype(jnp.float32)
        wb = w.astype(jnp.bfloat16).astype(jnp.float32)
        y = jax.lax.conv_general_dilated(
            xb, wb,
            window_strides=(2, 2, 2),
            padding=[(pad, pad)] * 3,
            dimension_numbers=("NCDHW", "OIDHW", "NCDHW"),
            precision=jax.lax.Precision.HIGHEST,
        )
        x = jnp.maximum(y + b.reshape(1, -1, 1, 1, 1), 0.0)
    return x


if __name__ == "__main__":
    key = jax.random.PRNGKey(0)
    k_in, k_par = jax.random.split(key)

    # Small shapes consistent with the VGN encoder (in_channels=1,
    # filters, kernels=[5,3,3]); spatial 16 -> 8 -> 4 -> 2.
    in_channels = 1
    filters = [4, 8, 16]
    kernels = [5, 3, 3]

    x = jax.random.normal(k_in, (2, in_channels, 16, 16, 16), jnp.float32)
    params = init_encoder_params(k_par, in_channels, filters, kernels)

    fwd = jax.jit(lambda v: encoder_forward(params, v))
    out = jax.block_until_ready(fwd(x))

    ref = jax.block_until_ready(_encoder_reference(params, x))
    assert out.shape == (2, filters[-1], 2, 2, 2), out.shape
    # Tolerance covers bf16 operand rounding differences accumulated over the
    # three chained layers (accumulation itself is f32 on both sides).
    assert jnp.allclose(out, ref, rtol=1e-2, atol=1e-2), (
        "mismatch vs reference, max abs diff = "
        f"{float(jnp.max(jnp.abs(out - ref)))}")

    print("KERNEL_OK")
</pallas_src>

<mosaic_0001>
module attributes {stable_mosaic.version = 11 : i64} {
  func.func @_matmul_bias_relu_kernel(%arg0: memref<8x128xbf16, #tpu.memory_space<vmem>>, %arg1: memref<128x1024xbf16, #tpu.memory_space<vmem>>, %arg2: memref<8x1xf32, #tpu.memory_space<vmem>>, %arg3: memref<8x1024xf32, #tpu.memory_space<vmem>>) attributes {dimension_semantics = [], scalar_prefetch = 0 : i64, scratch_operands = 0 : i64, tpu.core_type = #tpu.core_type<tc>} {
    %c0 = arith.constant 0 : index
    %c0_0 = arith.constant 0 : index
    %0 = vector.load %arg0[%c0, %c0_0] : memref<8x128xbf16, #tpu.memory_space<vmem>>, vector<8x128xbf16>
    %c0_1 = arith.constant 0 : index
    %c0_2 = arith.constant 0 : index
    %1 = vector.load %arg1[%c0_1, %c0_2] : memref<128x1024xbf16, #tpu.memory_space<vmem>>, vector<128x1024xbf16>
    %cst = arith.constant dense<0.000000e+00> : vector<8x1024xf32>
    %2 = tpu.matmul %0, %1, %cst {dimension_numbers = #tpu.dot_dimension_numbers<[1], [0], [0], [1], [0, 0, 1, 1], [], []>} : vector<8x128xbf16>, vector<128x1024xbf16>, vector<8x1024xf32> -> vector<8x1024xf32>
    %c0_3 = arith.constant 0 : index
    %c0_4 = arith.constant 0 : index
    %3 = vector.load %arg2[%c0_3, %c0_4] : memref<8x1xf32, #tpu.memory_space<vmem>>, vector<8x1xf32>
    %4 = vector.broadcast %3 : vector<8x1xf32> to vector<8x1024xf32>
    %5 = arith.addf %2, %4 : vector<8x1024xf32>
    %cst_5 = arith.constant 0.000000e+00 : f32
    %6 = vector.broadcast %cst_5 : f32 to vector<8x1024xf32>
    %7 = arith.maximumf %5, %6 : vector<8x1024xf32>
    %c0_6 = arith.constant 0 : index
    %c0_7 = arith.constant 0 : index
    %8 = vector.load %arg3[%c0_6, %c0_7] : memref<8x1024xf32, #tpu.memory_space<vmem>>, vector<8x1024xf32>
    tpu.vector_store %arg3[%c0_6, %c0_7], %7 {strides = array<i32>} : memref<8x1024xf32, #tpu.memory_space<vmem>>, vector<8x1024xf32>,
    return
  }
}

module attributes {stable_mosaic.version = 11 : i64} {
  func.func @_matmul_bias_relu_kernel(%arg0: memref<8x128xbf16, #tpu.memory_space<vmem>>, %arg1: memref<128x128xbf16, #tpu.memory_space<vmem>>, %arg2: memref<8x1xf32, #tpu.memory_space<vmem>>, %arg3: memref<8x128xf32, #tpu.memory_space<vmem>>) attributes {dimension_semantics = [], scalar_prefetch = 0 : i64, scratch_operands = 0 : i64, tpu.core_type = #tpu.core_type<tc>} {
    %c0 = arith.constant 0 : index
    %c0_0 = arith.constant 0 : index
    %0 = vector.load %arg0[%c0, %c0_0] : memref<8x128xbf16, #tpu.memory_space<vmem>>, vector<8x128xbf16>
    %c0_1 = arith.constant 0 : index
    %c0_2 = arith.constant 0 : index
    %1 = vector.load %arg1[%c0_1, %c0_2] : memref<128x128xbf16, #tpu.memory_space<vmem>>, vector<128x128xbf16>
    %cst = arith.constant dense<0.000000e+00> : vector<8x128xf32>
    %2 = tpu.matmul %0, %1, %cst {dimension_numbers = #tpu.dot_dimension_numbers<[1], [0], [0], [1], [0, 0, 1, 1], [], []>} : vector<8x128xbf16>, vector<128x128xbf16>, vector<8x128xf32> -> vector<8x128xf32>
    %c0_3 = arith.constant 0 : index
    %c0_4 = arith.constant 0 : index
    %3 = vector.load %arg2[%c0_3, %c0_4] : memref<8x1xf32, #tpu.memory_space<vmem>>, vector<8x1xf32>
    %4 = vector.broadcast %3 : vector<8x1xf32> to vector<8x128xf32>
    %5 = arith.addf %2, %4 : vector<8x128xf32>
    %cst_5 = arith.constant 0.000000e+00 : f32
    %6 = vector.broadcast %cst_5 : f32 to vector<8x128xf32>
    %7 = arith.maximumf %5, %6 : vector<8x128xf32>
    %c0_6 = arith.constant 0 : index
    %c0_7 = arith.constant 0 : index
    %8 = vector.load %arg3[%c0_6, %c0_7] : memref<8x128xf32, #tpu.memory_space<vmem>>, vector<8x128xf32>
    tpu.vector_store %arg3[%c0_6, %c0_7], %7 {strides = array<i32>} : memref<8x128xf32, #tpu.memory_space<vmem>>, vector<8x128xf32>,
    return
  }
}

module attributes {stable_mosaic.version = 11 : i64} {
  func.func @_matmul_bias_relu_kernel(%arg0: memref<16x256xbf16, #tpu.memory_space<vmem>>, %arg1: memref<256x16xbf16, #tpu.memory_space<vmem>>, %arg2: memref<16x1xf32, #tpu.memory_space<vmem>>, %arg3: memref<16x16xf32, #tpu.memory_space<vmem>>) attributes {dimension_semantics = [], scalar_prefetch = 0 : i64, scratch_operands = 0 : i64, tpu.core_type = #tpu.core_type<tc>} {
    %c0 = arith.constant 0 : index
    %c0_0 = arith.constant 0 : index
    %0 = vector.load %arg0[%c0, %c0_0] : memref<16x256xbf16, #tpu.memory_space<vmem>>, vector<16x256xbf16>
    %c0_1 = arith.constant 0 : index
    %c0_2 = arith.constant 0 : index
    %1 = vector.load %arg1[%c0_1, %c0_2] : memref<256x16xbf16, #tpu.memory_space<vmem>>, vector<256x16xbf16>
    %cst = arith.constant dense<0.000000e+00> : vector<16x16xf32>
    %2 = tpu.matmul %0, %1, %cst {dimension_numbers = #tpu.dot_dimension_numbers<[1], [0], [0], [1], [0, 0, 1, 1], [], []>} : vector<16x256xbf16>, vector<256x16xbf16>, vector<16x16xf32> -> vector<16x16xf32>
    %c0_3 = arith.constant 0 : index
    %c0_4 = arith.constant 0 : index
    %3 = vector.load %arg2[%c0_3, %c0_4] : memref<16x1xf32, #tpu.memory_space<vmem>>, vector<16x1xf32>
    %4 = vector.broadcast %3 : vector<16x1xf32> to vector<16x16xf32>
    %5 = arith.addf %2, %4 : vector<16x16xf32>
    %cst_5 = arith.constant 0.000000e+00 : f32
    %6 = vector.broadcast %cst_5 : f32 to vector<16x16xf32>
    %7 = arith.maximumf %5, %6 : vector<16x16xf32>
    %c0_6 = arith.constant 0 : index
    %c0_7 = arith.constant 0 : index
    %8 = vector.load %arg3[%c0_6, %c0_7] : memref<16x16xf32, #tpu.memory_space<vmem>>, vector<16x16xf32>
    tpu.vector_store %arg3[%c0_6, %c0_7], %7 {strides = array<i32>} : memref<16x16xf32, #tpu.memory_space<vmem>>, vector<16x16xf32>,
    return
  }
}

</mosaic_0001>

<bundles_post_ra>
// kernel: _lambda_.3
= control target key start
LH: loop header
LB: loop body
LE: loop exit
PB: predicated region body
PF: predicated region fallthrough
CT: control target
= control target key end

     0   :  { %v656_v3 = vmov 0   ;;  %s910_s1 = inlined_call_operand.vmem [shape: bf16[128,1024], index: 1, kind: input, shape index: {}]   ;;  %s911_s2 = inlined_call_operand.vmem [shape: f32[8,1], index: 2, kind: input, shape index: {}]   ;;  %s912_s0 = inlined_call_operand.vmem [shape: bf16[8,128], index: 0, kind: input, shape index: {}]   ;;  %s913_s3 = inlined_call_operand.vmem [shape: f32[8,1024], index: 3, kind: output, shape index: {}]  }
   0x1   :  { %v16_v0 = vld [vmem:[%s910_s1] sm:$0xff]  ;;  %v17_v2 = vld [vmem:[%s910_s1 + $0x8] sm:$0xff]  ;;  %438 = vmatprep.mubr.bf16.mxu0 %v656_v3  ;;  %479 = vmatprep.mubr.bf16.mxu1 %v656_v3 }
   0x2   :  { %v20_v1 = vld [vmem:[%s910_s1 + $0x20] sm:$0xff]  ;;  %v21_v5 = vld [vmem:[%s910_s1 + $0x28] sm:$0xff]  ;;  %655 = vset.pattern.permute.xlu0 %v656_v3 }
   0x3   :  { %v591_v4 = vcombine.high %v16_v0, %v20_v1  ;;  %v590_v6 = vcombine.low %v16_v0, %v20_v1  ;;  %v24_v7 = vld [vmem:[%s910_s1 + $0x40] sm:$0xff]  ;;  %v593_v9 = vcombine.high %v17_v2, %v21_v5  ;;  %v592_v10 = vcombine.low %v17_v2, %v21_v5  ;;  %v25_v12 = vld [vmem:[%s910_s1 + $0x48] sm:$0xff]  ;;  %v18_v0 = vld [vmem:[%s910_s1 + $0x10] sm:$0xff] }
   0x4   :  { %v28_v8 = vld [vmem:[%s910_s1 + $0x60] sm:$0xff]  ;;  %v29_v13 = vld [vmem:[%s910_s1 + $0x68] sm:$0xff]  ;;  %v22_v1 = vld [vmem:[%s910_s1 + $0x30] sm:$0xff] }
   0x5   :  { %v599_v11 = vcombine.high %v24_v7, %v28_v8  ;;  %v32_v14 = vld [vmem:[%s910_s1 + $0x80] sm:$0xff]  ;;  %406 = vmatprep.subr.bf16.mxu0 %v591_v4  ;;  %v601_v15 = vcombine.high %v25_v12, %v29_v13  ;;  %v33_v17 = vld [vmem:[%s910_s1 + $0x88] sm:$0xff]  ;;  %447 = vmatprep.subr.bf16.mxu1 %v593_v9  ;;  %v598_v19 = vcombine.low %v24_v7, %v28_v8  ;;  %v19_v2 = vld [vmem:[%s910_s1 + $0x18] sm:$0xff] }
   0x6   :  { %v36_v16 = vld [vmem:[%s910_s1 + $0xa0] sm:$0xff]  ;;  %v37_v18 = vld [vmem:[%s910_s1 + $0xa8] sm:$0xff]  ;;  %407 = vmatpush1.bf16.msra.mxu0 %v590_v6  ;;  %448 = vmatpush1.bf16.msra.mxu1 %v592_v10  ;;  %v600_v20 = vcombine.low %v25_v12, %v29_v13  ;;  %v23_v4 = vld [vmem:[%s910_s1 + $0x38] sm:$0xff]  ;;  %v595_v7 = vcombine.high %v18_v0, %v22_v1 }
   0x7   :  { %408 = vmatprep.subr.bf16.mxu0 %v599_v11  ;;  %v607_v21 = vcombine.high %v32_v14, %v36_v16  ;;  %449 = vmatprep.subr.bf16.mxu1 %v601_v15  ;;  %v609_v22 = vcombine.high %v33_v17, %v37_v18  ;;  %v40_v23 = vld [vmem:[%s910_s1 + $0xc0] sm:$0xff]  ;;  %v41_v25 = vld [vmem:[%s910_s1 + $0xc8] sm:$0xff]  ;;  %v606_v27 = vcombine.low %v32_v14, %v36_v16  ;;  %v26_v9 = vld [vmem:[%s910_s1 + $0x50] sm:$0xff] }
   0x8   :  { %v44_v24 = vld [vmem:[%s910_s1 + $0xe0] sm:$0xff]  ;;  %v45_v26 = vld [vmem:[%s910_s1 + $0xe8] sm:$0xff]  ;;  %v608_v28 = vcombine.low %v33_v17, %v37_v18  ;;  %v597_v8 = vcombine.high %v19_v2, %v23_v4  ;;  %v30_v10 = vld [vmem:[%s910_s1 + $0x70] sm:$0xff]  ;;  %v594_v14 = vcombine.low %v18_v0, %v22_v1  ;;  %v596_v15 = vcombine.low %v19_v2, %v23_v4 }
   0x9   :  { %v615_v29 = vcombine.high %v40_v23, %v44_v24  ;;  %v617_v30 = vcombine.high %v41_v25, %v45_v26  ;;  %v48_v31 = vld [vmem:[%s910_s1 + $0x100] sm:$0xff]  ;;  %v49_v33 = vld [vmem:[%s910_s1 + $0x108] sm:$0xff]  ;;  %v614_v35 = vcombine.low %v40_v23, %v44_v24  ;;  %v616_v36 = vcombine.low %v41_v25, %v45_v26  ;;  %v27_v11 = vld [vmem:[%s910_s1 + $0x58] sm:$0xff] }
   0xa   :  { %409 = vmatpush1.bf16.msra.mxu0 %v598_v19  ;;  %450 = vmatpush1.bf16.msra.mxu1 %v600_v20  ;;  %v52_v32 = vld [vmem:[%s910_s1 + $0x120] sm:$0xff]  ;;  %v53_v34 = vld [vmem:[%s910_s1 + $0x128] sm:$0xff]  ;;  %v31_v12 = vld [vmem:[%s910_s1 + $0x78] sm:$0xff]  ;;  %v603_v16 = vcombine.high %v26_v9, %v30_v10 }
   0xb   :  { %410 = vmatprep.subr.bf16.mxu0 %v607_v21  ;;  %451 = vmatprep.subr.bf16.mxu1 %v609_v22  ;;  %v623_v37 = vcombine.high %v48_v31, %v52_v32  ;;  %v625_v38 = vcombine.high %v49_v33, %v53_v34  ;;  %v56_v39 = vld [vmem:[%s910_s1 + $0x140] sm:$0xff]  ;;  %v57_v41 = vld [vmem:[%s910_s1 + $0x148] sm:$0xff]  ;;  %v622_v43 = vcombine.low %v48_v31, %v52_v32  ;;  %v34_v18 = vld [vmem:[%s910_s1 + $0x90] sm:$0xff] }
   0xc   :  { %v60_v40 = vld [vmem:[%s910_s1 + $0x160] sm:$0xff]  ;;  %v61_v42 = vld [vmem:[%s910_s1 + $0x168] sm:$0xff]  ;;  %v624_v44 = vcombine.low %v49_v33, %v53_v34  ;;  %v605_v17 = vcombine.high %v27_v11, %v31_v12  ;;  %v38_v19 = vld [vmem:[%s910_s1 + $0xb0] sm:$0xff]  ;;  %v602_v22 = vcombine.low %v26_v9, %v30_v10  ;;  %v604_v23 = vcombine.low %v27_v11, %v31_v12 }
   0xd   :  { %v631_v45 = vcombine.high %v56_v39, %v60_v40  ;;  %v633_v46 = vcombine.high %v57_v41, %v61_v42  ;;  %v64_v47 = vld [vmem:[%s910_s1 + $0x180] sm:$0xff]  ;;  %v65_v49 = vld [vmem:[%s910_s1 + $0x188] sm:$0xff]  ;;  %v630_v51 = vcombine.low %v56_v39, %v60_v40  ;;  %v632_v52 = vcombine.low %v57_v41, %v61_v42  ;;  %v35_v20 = vld [vmem:[%s910_s1 + $0x98] sm:$0xff] }
   0xe   :  { %411 = vmatpush1.bf16.msra.mxu0 %v606_v27  ;;  %452 = vmatpush1.bf16.msra.mxu1 %v608_v28  ;;  %v68_v48 = vld [vmem:[%s910_s1 + $0x1a0] sm:$0xff]  ;;  %v69_v50 = vld [vmem:[%s910_s1 + $0x1a8] sm:$0xff]  ;;  %v39_v21 = vld [vmem:[%s910_s1 + $0xb8] sm:$0xff]  ;;  %v611_v24 = vcombine.high %v34_v18, %v38_v19 }
   0xf   :  { %412 = vmatprep.subr.bf16.mxu0 %v615_v29  ;;  %453 = vmatprep.subr.bf16.mxu1 %v617_v30  ;;  %v639_v53 = vcombine.high %v64_v47, %v68_v48  ;;  %v80_v54 = vld [vmem:[%s911_s2] sm:$0xff]  ;;  %v641_v55 = vcombine.high %v65_v49, %v69_v50  ;;  %v73_v58 = vld [vmem:[%s910_s1 + $0x1c8] sm:$0xff]  ;;  %v638_v60 = vcombine.low %v64_v47, %v68_v48  ;;  %v42_v26 = vld [vmem:[%s910_s1 + $0xd0] sm:$0xff] }
  0x10   :  { %v72_v56 = vld [vmem:[%s910_s1 + $0x1c0] sm:$0xff]  ;;  %83 = vperm.xlu0 %655, %v80_v54   ;;  %v77_v59 = vld [vmem:[%s910_s1 + $0x1e8] sm:$0xff]  ;;  %v640_v61 = vcombine.low %v65_v49, %v69_v50  ;;  %v613_v25 = vcombine.high %v35_v20, %v39_v21  ;;  %v46_v27 = vld [vmem:[%s910_s1 + $0xf0] sm:$0xff]  ;;  %v610_v30 = vcombine.low %v34_v18, %v38_v19  ;;  %v612_v31 = vcombine.low %v35_v20, %v39_v21 }
  0x11   :  { %v76_v57 = vld [vmem:[%s910_s1 + $0x1e0] sm:$0xff]  ;;  %v649_v63 = vcombine.high %v73_v58, %v77_v59  ;;  %v648_v6 = vcombine.low %v73_v58, %v77_v59  ;;  %v43_v28 = vld [vmem:[%s910_s1 + $0xd8] sm:$0xff]  ;;  %v619_v32 = vcombine.high %v42_v26, %v46_v27  ;;  %v50_v34 = vld [vmem:[%s910_s1 + $0x110] sm:$0xff] }
  0x12   :  { %413 = vmatpush1.bf16.msra.mxu0 %v614_v35  ;;  %454 = vmatpush1.bf16.msra.mxu1 %v616_v36  ;;  %v647_v62 = vcombine.high %v72_v56, %v76_v57  ;;  %v646_v5 = vcombine.low %v72_v56, %v76_v57  ;;  %v806_v13 = vld [vmem:[%s912_s0] sm:$0xf]  ;;  %v47_v29 = vld [vmem:[%s910_s1 + $0xf8] sm:$0xff]  ;;  %v54_v35 = vld [vmem:[%s910_s1 + $0x130] sm:$0xff] }
  0x13   :  { %414 = vmatprep.subr.bf16.mxu0 %v623_v37  ;;  %455 = vmatprep.subr.bf16.mxu1 %v625_v38  ;;  %v621_v33 = vcombine.high %v43_v28, %v47_v29  ;;  %v55_v36 = vld [vmem:[%s910_s1 + $0x138] sm:$0xff]  ;;  %v618_v37 = vcombine.low %v42_v26, %v46_v27  ;;  %v620_v38 = vcombine.low %v43_v28, %v47_v29  ;;  %v58_v41 = vld [vmem:[%s910_s1 + $0x150] sm:$0xff] }
  0x14   :  { %v627_v39 = vcombine.high %v50_v34, %v54_v35  ;;  %v62_v42 = vld [vmem:[%s910_s1 + $0x170] sm:$0xff]  ;;  %v75_v59 = vld [vmem:[%s910_s1 + $0x1d8] sm:$0xff] }
  0x15   :  { %v635_v47 = vcombine.high %v58_v41, %v62_v42  ;;  %v66_v49 = vld [vmem:[%s910_s1 + $0x190] sm:$0xff] }
  0x16   :  { %415 = vmatpush1.bf16.msra.mxu0 %v622_v43  ;;  %456 = vmatpush1.bf16.msra.mxu1 %v624_v44  ;;  %v59_v43 = vld [vmem:[%s910_s1 + $0x158] sm:$0xff]  ;;  %v70_v50 = vld [vmem:[%s910_s1 + $0x1b0] sm:$0xff] }
  0x17   :  { %416 = vmatprep.subr.bf16.mxu0 %v631_v45  ;;  %457 = vmatprep.subr.bf16.mxu1 %v633_v46  ;;  %v63_v44 = vld [vmem:[%s910_s1 + $0x178] sm:$0xff]  ;;  %v626_v45 = vcombine.low %v50_v34, %v54_v35  ;;  %v74_v57 = vld [vmem:[%s910_s1 + $0x1d0] sm:$0xff] }
  0x18   :  { %v637_v48 = vcombine.high %v59_v43, %v63_v44  ;;  %v636_v54 = vcombine.low %v59_v43, %v63_v44  ;;  %v78_v58 = vld [vmem:[%s910_s1 + $0x1f0] sm:$0xff] }
  0x19   :  { %v650_v1 = vcombine.low %v74_v57, %v78_v58 }
  0x1a   :  { %417 = vmatpush1.bf16.msra.mxu0 %v630_v51  ;;  %458 = vmatpush1.bf16.msra.mxu1 %v632_v52  ;;  %v67_v51 = vld [vmem:[%s910_s1 + $0x198] sm:$0xff] }
  0x1b   :  { %418 = vmatprep.subr.bf16.mxu0 %v639_v53  ;;  %459 = vmatprep.subr.bf16.mxu1 %v641_v55  ;;  %v71_v52 = vld [vmem:[%s910_s1 + $0x1b8] sm:$0xff]  ;;  %v634_v53 = vcombine.low %v58_v41, %v62_v42  ;;  %v643_v55 = vcombine.high %v66_v49, %v70_v50 }
  0x1c   :  { %v645_v56 = vcombine.high %v67_v51, %v71_v52 }
  0x1e   :  { %419 = vmatpush1.bf16.msra.mxu0 %v638_v60  ;;  %460 = vmatpush1.bf16.msra.mxu1 %v640_v61  ;;  %v79_v60 = vld [vmem:[%s910_s1 + $0x1f8] sm:$0xff]  ;;  %v642_v61 = vcombine.low %v66_v49, %v70_v50 }
  0x1f   :  { %420 = vmatprep.subr.bf16.mxu0 %v647_v62  ;;  %461 = vmatprep.subr.bf16.mxu1 %v649_v63  ;;  %v644_v62 = vcombine.low %v67_v51, %v71_v52  ;;  %v651_v63 = vcombine.high %v74_v57, %v78_v58  ;;  %v653_v0 = vcombine.high %v75_v59, %v79_v60 }
  0x20   :  { %v652_v2 = vcombine.low %v75_v59, %v79_v60 }
  0x22   :  { %421 = vmatpush1.bf16.msra.mxu0 %v646_v5  ;;  %462 = vmatpush1.bf16.msra.mxu1 %v648_v6 }
  0x23   :  { %488 = vmatprep.subr.bf16.mxu0 %v595_v7  ;;  %529 = vmatprep.subr.bf16.mxu1 %v597_v8 }
  0x25   :  { %439 = vmatmul.mubr.bf16.vlgmr.msra.gmra.mrb[0].mxu0 %v806_v13  ;;  %480 = vmatmul.mubr.bf16.vlgmr.msra.gmra.mrb[0].mxu1 %v806_v13 }
  0x26   :  { %489 = vmatpush1.bf16.msra.mxu0 %v594_v14  ;;  %530 = vmatpush1.bf16.msra.mxu1 %v596_v15 }
  0x27   :  { %490 = vmatprep.subr.bf16.mxu0 %v603_v16  ;;  %531 = vmatprep.subr.bf16.mxu1 %v605_v17 }
  0x28   :  { %520 = vmatprep.mubr.bf16.mxu0 %v656_v3  ;;  %561 = vmatprep.mubr.bf16.mxu1 %v656_v3  ;;  %v51_v3 = vld [vmem:[%s910_s1 + $0x118] sm:$0xff] }
  0x29   :  { %v629_v40 = vcombine.high %v51_v3, %v55_v36  ;;  %v628_v46 = vcombine.low %v51_v3, %v55_v36 }
  0x2a   :  { %491 = vmatpush1.bf16.msra.mxu0 %v602_v22  ;;  %532 = vmatpush1.bf16.msra.mxu1 %v604_v23 }
  0x2b   :  { %492 = vmatprep.subr.bf16.mxu0 %v611_v24  ;;  %533 = vmatprep.subr.bf16.mxu1 %v613_v25 }
  0x2e   :  { %493 = vmatpush1.bf16.msra.mxu0 %v610_v30  ;;  %534 = vmatpush1.bf16.msra.mxu1 %v612_v31 }
  0x2f   :  { %494 = vmatprep.subr.bf16.mxu0 %v619_v32  ;;  %535 = vmatprep.subr.bf16.mxu1 %v621_v33 }
  0x32   :  { %495 = vmatpush1.bf16.msra.mxu0 %v618_v37  ;;  %536 = vmatpush1.bf16.msra.mxu1 %v620_v38 }
  0x33   :  { %496 = vmatprep.subr.bf16.mxu0 %v627_v39  ;;  %537 = vmatprep.subr.bf16.mxu1 %v629_v40 }
  0x36   :  { %497 = vmatpush1.bf16.msra.mxu0 %v626_v45  ;;  %538 = vmatpush1.bf16.msra.mxu1 %v628_v46 }
  0x37   :  { %498 = vmatprep.subr.bf16.mxu0 %v635_v47  ;;  %539 = vmatprep.subr.bf16.mxu1 %v637_v48 }
  0x3a   :  { %499 = vmatpush1.bf16.msra.mxu0 %v634_v53  ;;  %540 = vmatpush1.bf16.msra.mxu1 %v636_v54 }
  0x3b   :  { %500 = vmatprep.subr.bf16.mxu0 %v643_v55  ;;  %541 = vmatprep.subr.bf16.mxu1 %v645_v56 }
  0x3e   :  { %501 = vmatpush1.bf16.msra.mxu0 %v642_v61  ;;  %542 = vmatpush1.bf16.msra.mxu1 %v644_v62 }
  0x3f   :  { %502 = vmatprep.subr.bf16.mxu0 %v651_v63  ;;  %543 = vmatprep.subr.bf16.mxu1 %v653_v0 }
  0x42   :  { %503 = vmatpush1.bf16.msra.mxu0 %v650_v1  ;;  %544 = vmatpush1.bf16.msra.mxu1 %v652_v2 }
  0x45   :  { %521 = vmatmul.mubr.bf16.vlgmr.msra.gmra.mrb[4].mxu0 %v806_v13  ;;  %562 = vmatmul.mubr.bf16.vlgmr.msra.gmra.mrb[4].mxu1 %v806_v13 }
  0x8f   :  { %v84_v4 = vpop.permute.xlu0 %83 }
  0xf8   :  { %v440_v5 = vpop.f32.mrb[0].mxu0  ;;  %v481_v6 = vpop.f32.mrb[0].mxu1 }
  0xf9   :  { %v441_v7 = vadd.f32 %v440_v5, %v84_v4  ;;  %v442_v8 = vpop.f32.mrb[1].mxu0  ;;  %v482_v9 = vadd.f32 %v481_v6, %v84_v4  ;;  %v483_v11 = vpop.f32.mrb[1].mxu1 }
  0xfa   :  { %v443_v10 = vadd.f32 %v442_v8, %v84_v4  ;;  %v444_v12 = vpop.f32.mrb[2].mxu0  ;;  %v484_v15 = vadd.f32 %v483_v11, %v84_v4  ;;  %v485_v16 = vpop.f32.mrb[2].mxu1 }
  0xfb   :  { %v570_v14 = vmax.f32 %v441_v7, 0.0  ;;  %v445_v17 = vpop.f32.mrb[3].mxu0  ;;  %v572_v18 = vmax.f32 %v482_v9, 0.0  ;;  %v486_v20 = vpop.f32.mrb[3].mxu1 }
  0xfc   :  { %v571_v19 = vmax.f32 %v443_v10, 0.0  ;;  %v573_v13 = vmax.f32 %v484_v15, 0.0 }
  0xfd   :  { %578 = vst [vmem:[%s913_s3] sm:$0xff] %v570_v14  ;;  %580 = vst [vmem:[%s913_s3 + $0x10] sm:$0xff] %v572_v18 }
  0xfe   :  { %579 = vst [vmem:[%s913_s3 + $0x8] sm:$0xff] %v571_v19  ;;  %581 = vst [vmem:[%s913_s3 + $0x18] sm:$0xff] %v573_v13 }
 0x118   :  { %v522_v21 = vpop.f32.mrb[4].mxu0  ;;  %v563_v23 = vpop.f32.mrb[4].mxu1 }
 0x119   :  { %v523_v22 = vadd.f32 %v522_v21, %v84_v4  ;;  %v524_v24 = vpop.f32.mrb[5].mxu0  ;;  %v564_v25 = vadd.f32 %v563_v23, %v84_v4  ;;  %v565_v27 = vpop.f32.mrb[5].mxu1 }
 0x11a   :  { %v525_v26 = vadd.f32 %v524_v24, %v84_v4  ;;  %v526_v28 = vpop.f32.mrb[6].mxu0  ;;  %v566_v30 = vadd.f32 %v565_v27, %v84_v4  ;;  %v567_v31 = vpop.f32.mrb[6].mxu1 }
 0x11b   :  { %v574_v29 = vmax.f32 %v523_v22, 0.0  ;;  %v527_v32 = vpop.f32.mrb[7].mxu0  ;;  %v576_v33 = vmax.f32 %v564_v25, 0.0  ;;  %v568_v35 = vpop.f32.mrb[7].mxu1 }
 0x11c   :  { %v575_v34 = vmax.f32 %v525_v26, 0.0  ;;  %v577_v3 = vmax.f32 %v566_v30, 0.0 }
 0x11d   :  { %582 = vst [vmem:[%s913_s3 + $0x20] sm:$0xff] %v574_v29  ;;  %584 = vst [vmem:[%s913_s3 + $0x30] sm:$0xff] %v576_v33 }
 0x11e   :  { %583 = vst [vmem:[%s913_s3 + $0x28] sm:$0xff] %v575_v34  ;;  %585 = vst [vmem:[%s913_s3 + $0x38] sm:$0xff] %v577_v3 }

// kernel: _lambda_.4
= control target key start
LH: loop header
LB: loop body
LE: loop exit
PB: predicated region body
PF: predicated region fallthrough
CT: control target
= control target key end

     0   :  { %v181_v0 = vmov 0.0   ;;  %vm182_vm0 = vmmov 0   ;;  %v183_v2 = vmov 0   ;;  %s237_s1 = inlined_call_operand.vmem [shape: bf16[128,128], index: 1, kind: input, shape index: {}]   ;;  %s238_s2 = inlined_call_operand.vmem [shape: f32[8,1], index: 2, kind: input, shape index: {}]   ;;  %s239_s0 = inlined_call_operand.vmem [shape: bf16[8,128], index: 0, kind: input, shape index: {}]   ;;  %s240_s3 = inlined_call_operand.vmem [shape: f32[8,128], index: 3, kind: output, shape index: {}]  }
   0x1   :  { %149 = vmatprep.subr.bf16.mxu0 %v181_v0  ;;  %v173_v1 = vld [vmem:[%s237_s1] sm:$0xff]   ;;  %165 = vmatprep.mubr.msk.bf16.mxu0 %vm182_vm0, %v181_v0  ;;  %v174_v3 = vld [vmem:[%s237_s1 + $0x8] sm:$0xff]   ;;  %v175_v4 = vld [vmem:[%s237_s1 + $0x10] sm:$0xff]  }
   0x2   :  { %172 = vset.pattern.permute.xlu0 %v183_v2  ;;  %150 = vmatpush3.bf16.msra.mxu0 %v173_v1  ;;  %v32_v5 = vld [vmem:[%s238_s2] sm:$0xff]  ;;  %v176_v6 = vld [vmem:[%s237_s1 + $0x18] sm:$0xff]   ;;  %v178_v8 = vld [vmem:[%s237_s1 + $0x28] sm:$0xff]  }
   0x3   :  { %151 = vmatprep.subr.bf16.mxu0 %v181_v0  ;;  %35 = vperm.xlu0 %172, %v32_v5   ;;  %v177_v7 = vld [vmem:[%s237_s1 + $0x20] sm:$0xff]   ;;  %v179_v9 = vld [vmem:[%s237_s1 + $0x30] sm:$0xff]   ;;  %v180_v10 = vld [vmem:[%s237_s1 + $0x38] sm:$0xff]  }
   0x4   :  { %v15_v11 = vld [vmem:[%s239_s0] sm:$0xf] }
   0x6   :  { %152 = vmatpush3.bf16.msra.mxu0 %v174_v3 }
   0x7   :  { %153 = vmatprep.subr.bf16.mxu0 %v181_v0 }
   0xa   :  { %154 = vmatpush3.bf16.msra.mxu0 %v175_v4 }
   0xb   :  { %155 = vmatprep.subr.bf16.mxu0 %v181_v0 }
   0xe   :  { %156 = vmatpush3.bf16.msra.mxu0 %v176_v6 }
   0xf   :  { %157 = vmatprep.subr.bf16.mxu0 %v181_v0 }
  0x12   :  { %158 = vmatpush3.bf16.msra.mxu0 %v177_v7 }
  0x13   :  { %159 = vmatprep.subr.bf16.mxu0 %v181_v0 }
  0x16   :  { %160 = vmatpush3.bf16.msra.mxu0 %v178_v8 }
  0x17   :  { %161 = vmatprep.subr.bf16.mxu0 %v181_v0 }
  0x1a   :  { %162 = vmatpush3.bf16.msra.mxu0 %v179_v9 }
  0x1b   :  { %163 = vmatprep.subr.bf16.mxu0 %v181_v0 }
  0x1e   :  { %164 = vmatpush3.bf16.msra.mxu0 %v180_v10 }
  0x21   :  { %166 = vmatmul.mubr.bf16.vlgmr.msra.gmra.mrb[0].mxu0 %v15_v11 }
  0x82   :  { %v36_v12 = vpop.permute.xlu0 %35 }
  0xf4   :  { %v120_v13 = vpop.f32.mrb[0].mxu0 }
  0xf5   :  { %v121_v14 = vadd.f32 %v120_v13, %v36_v12  ;;  %v167_v15 = vpop.f32.mrb[1].mxu0 }
  0xf6   :  { %v123_v16 = vpop.f32.mrb[2].mxu0 }
  0xf7   :  { %v126_v17 = vmax.f32 %v121_v14, 0.0  ;;  %v168_v18 = vpop.f32.mrb[3].mxu0 }
  0xf9   :  { %127 = vst [vmem:[%s240_s3] sm:$0xff] %v126_v17 }

// kernel: _lambda_.5
= control target key start
LH: loop header
LB: loop body
LE: loop exit
PB: predicated region body
PF: predicated region fallthrough
CT: control target
= control target key end

     0   :  { %v278_v1 = vmov 0   ;;  %vm210_vm0 = vcmask 130048   ;;  %s365_s1 = inlined_call_operand.vmem [shape: bf16[256,16], index: 1, kind: input, shape index: {}]   ;;  %s366_s0 = inlined_call_operand.vmem [shape: bf16[16,256], index: 0, kind: input, shape index: {}]   ;;  %s367_s2 = inlined_call_operand.vmem [shape: f32[16,1], index: 2, kind: input, shape index: {}]   ;;  %s368_s3 = inlined_call_operand.vmem [shape: f32[16,16], index: 3, kind: output, shape index: {}]  }
   0x1   :  { %v259_v0 = vld [vmem:[%s365_s1 + $0x40] sm:$0xff]   ;;  %258 = vset.pattern.permute.xlu0 %v278_v1  ;;  %v261_v3 = vld [vmem:[%s365_s1 + $0x48] sm:$0xff]   ;;  %v263_v5 = vld [vmem:[%s365_s1 + $0x50] sm:$0xff]  }
   0x2   :  { %v260_v2 = vld [vmem:[%s365_s1] sm:$0xff]   ;;  %235 = vmatprep.subr.bf16.mxu0 %v259_v0  ;;  %v262_v4 = vld [vmem:[%s365_s1 + $0x8] sm:$0xff]   ;;  %v264_v6 = vld [vmem:[%s365_s1 + $0x10] sm:$0xff]  }
   0x3   :  { %236 = vmatpush3.bf16.msra.mxu0 %v260_v2  ;;  %v265_v7 = vld [vmem:[%s365_s1 + $0x58] sm:$0xff]   ;;  %v267_v9 = vld [vmem:[%s365_s1 + $0x60] sm:$0xff]   ;;  %v269_v11 = vld [vmem:[%s365_s1 + $0x68] sm:$0xff]  }
   0x4   :  { %237 = vmatprep.subr.bf16.mxu0 %v261_v3  ;;  %v266_v8 = vld [vmem:[%s365_s1 + $0x18] sm:$0xff]   ;;  %v268_v10 = vld [vmem:[%s365_s1 + $0x20] sm:$0xff]   ;;  %v270_v14 = vld [vmem:[%s365_s1 + $0x28] sm:$0xff]  }
   0x5   :  { %v277_v12 = vld [vmem:[%s366_s0 + $0x4] ss:$8 sps:$4 sm:$0xff]   ;;  %v271_v16 = vld [vmem:[%s365_s1 + $0x70] sm:$0xff]   ;;  %v273_v18 = vld [vmem:[%s365_s1 + $0x78] sm:$0xff]  }
   0x6   :  { %v49_v13 = vld [vmem:[%s367_s2] sm:$0xff]  ;;  %199 = vmatprep.mubr.bf16.mxu0 %v277_v12  ;;  %v50_v15 = vld [vmem:[%s367_s2 + $0x8] sm:$0xff]  ;;  %v272_v17 = vld [vmem:[%s365_s1 + $0x30] sm:$0xff]  }
   0x7   :  { %238 = vmatpush3.bf16.msra.mxu0 %v262_v4  ;;  %53 = vperm.xlu0 %258, %v49_v13   ;;  %v274_v19 = vld [vmem:[%s365_s1 + $0x38] sm:$0xff]   ;;  %v275_v20 = vld [vmem:[%s366_s0] ss:$8 sps:$4 sm:$0xff]  }
   0x8   :  { %239 = vmatprep.subr.bf16.mxu0 %v263_v5 }
   0xb   :  { %240 = vmatpush3.bf16.msra.mxu0 %v264_v6  ;;  %58 = vperm.xlu0 %258, %v50_v15  }
   0xc   :  { %241 = vmatprep.subr.bf16.mxu0 %v265_v7 }
   0xf   :  { %242 = vmatpush3.bf16.msra.mxu0 %v266_v8 }
  0x10   :  { %243 = vmatprep.subr.bf16.mxu0 %v267_v9 }
  0x13   :  { %244 = vmatpush3.bf16.msra.mxu0 %v268_v10 }
  0x14   :  { %245 = vmatprep.subr.bf16.mxu0 %v269_v11 }
  0x17   :  { %246 = vmatpush3.bf16.msra.mxu0 %v270_v14 }
  0x18   :  { %247 = vmatprep.subr.bf16.mxu0 %v271_v16 }
  0x1b   :  { %248 = vmatpush3.bf16.msra.mxu0 %v272_v17 }
  0x1c   :  { %249 = vmatprep.subr.bf16.mxu0 %v273_v18 }
  0x1f   :  { %250 = vmatpush3.bf16.msra.mxu0 %v274_v19 }
  0x22   :  { %200 = vmatmul.mubr.bf16.vlgmr.msra.gmra.mrb[0].mxu0 %v275_v20 }
  0x86   :  { %v54_v21 = vpop.permute.xlu0 %53 }
  0x8a   :  { %v59_v29 = vpop.permute.xlu0 %58 }
  0xf5   :  { %v251_v22 = vpop.f32.mrb[0].mxu0 }
  0xf6   :  { %v252_v23 = vpop.f32.mrb[1].mxu0 }
  0xf7   :  { %v253_v24 = vadd.f32 %v252_v23, %v251_v22  ;;  %v254_v25 = vpop.f32.mrb[2].mxu0 }
  0xf8   :  { %v255_v26 = vpop.f32.mrb[3].mxu0 }
  0xf9   :  { %v202_v27 = vadd.f32 %v253_v24, %v54_v21  ;;  %v256_v28 = vadd.f32 %v255_v26, %v254_v25 }
  0xfb   :  { %v208_v30 = vmax.f32 %v202_v27, 0.0  ;;  %v205_v31 = vadd.f32 %v256_v28, %v59_v29 }
  0xfd   :  { %211 = vst.msk [vmem:[%s368_s3] sm:$0xff] %vm210_vm0, %v208_v30  ;;  %v209_v32 = vmax.f32 %v205_v31, 0.0 }
  0xff   :  { %212 = vst.msk [vmem:[%s368_s3 + $0x8] sm:$0xff] %vm210_vm0, %v209_v32 }

</bundles_post_ra>
